<compile_context>
chip_gen: v7x
topology: tpu7x:2x2x1
jax: 0.10.0
libtpu: 0.0.40
codegen_flags: <defaults>
</compile_context>

<pallas_src>
import functools

import jax
import jax.numpy as jnp
from jax.experimental import pallas as pl
from jax.experimental.pallas import tpu as pltpu


def _round_up(v, m):
    return (v + m - 1) // m * m


def _chip_tuning():
    """Per-TPU-generation tiling knobs (safe defaults off-TPU / interpret)."""
    kind = ""
    try:
        kind = jax.devices()[0].device_kind.lower()
    except Exception:
        pass
    if "7x" in kind or "v7" in kind:
        # v7x: 64 MiB VMEM (32 MiB default scoped), ~3.2 TB/s HBM, 2 TensorCores.
        # 1024 tiles @ 3-deep A buffering = 6 MiB; keep grid_i even so both TCs work.
        return dict(tile_cap=1024, a_depth=3, vmem_limit=24 << 20, even_grid_i=True)
    if "v6" in kind:
        # v6e: 128 MiB VMEM; 1024 tiles ~86% of HBM roofline, 3-deep hides DMA.
        return dict(tile_cap=1024, a_depth=3, vmem_limit=24 << 20, even_grid_i=False)
    if "v5" in kind:
        # v5e: ~820 GB/s HBM -> default double-buffer already covers the next tile.
        return dict(tile_cap=1024, a_depth=2, vmem_limit=None, even_grid_i=False)
    # Unknown backend (e.g. CPU interpret) -> conservative.
    return dict(tile_cap=512, a_depth=2, vmem_limit=None, even_grid_i=False)


def gcn_conv_kernel(seed_ref, a_ref, x_ref, w1_ref, pa_ref, o_ref, acc_ref,
                    *, tile, training):
    """Grid = (dst-node tiles i [parallel], src-node tiles k [reduction])."""
    i = pl.program_id(0)
    k = pl.program_id(1)

    @pl.when(k == 0)
    def _init():
        acc_ref[...] = jnp.zeros_like(acc_ref)

    # conv1 aggregation, reassociated so A contracts against the narrow F_in:
    #   acc[tile_i] += A[tile_i, tile_k] @ X[tile_k]   (bf16 inputs, f32 accumulate)
    src0 = pl.multiple_of(k * tile, tile)
    acc_ref[...] += jnp.dot(a_ref[...], x_ref[pl.ds(src0, tile), :],
                            preferred_element_type=jnp.float32)

    @pl.when(k == pl.num_programs(1) - 1)
    def _finalize():
        # conv1 linear (tiny, bf16 operands): (A @ X) @ W1 -> [tile, H_pad]
        h = jnp.dot(acc_ref[...].astype(jnp.bfloat16), w1_ref[...],
                    preferred_element_type=jnp.float32)
        h = jnp.maximum(h, 0.0)                                   # relu

        if training:
            # F.dropout default (p=0.5, training=True): counter-based integer
            # hash (murmur3 fmix32 style) over (global row, col, seed).  Plain
            # jnp bit ops on the VPU -- portable (no TPU-only PRNG primitives).
            rows = (jax.lax.broadcasted_iota(jnp.int32, h.shape, 0)
                    + i * tile).astype(jnp.uint32)
            cols = jax.lax.broadcasted_iota(jnp.int32, h.shape, 1).astype(jnp.uint32)
            z = (rows * jnp.uint32(0x9E3779B1)
                 + cols * jnp.uint32(0x85EBCA77)
                 + seed_ref[0].astype(jnp.uint32))
            z = z ^ (z >> 16)
            z = z * jnp.uint32(0x7FEB352D)
            z = z ^ (z >> 15)
            z = z * jnp.uint32(0x846CA68B)
            z = z ^ (z >> 16)
            # keep-mask (bit 0) folded with the 1/(1-p) = 2.0 rescale.
            h = h * jnp.where((z & jnp.uint32(1)) == jnp.uint32(0),
                              jnp.float32(0.0), jnp.float32(2.0))

        # Mean-pool folded through conv2's aggregation (exact, no nonlinearity
        # in between): partial_i = (P @ A)[:, tile_i] @ h1[tile_i] -> [G_pad, H_pad]
        o_ref[0] = jnp.dot(pa_ref[...], h.astype(jnp.bfloat16),
                           preferred_element_type=jnp.float32)


def gcn_head_kernel(part_ref, wf_ref, b_ref, o_ref):
    pooled = jnp.sum(part_ref[...], axis=0)                       # [G_pad, H_pad]
    logits = jnp.dot(pooled, wf_ref[...],
                     preferred_element_type=jnp.float32) + b_ref[...]
    o_ref[...] = jax.nn.sigmoid(logits)


def gcn_forward(x, edge_index, batch, num_graphs, w1, w2, w_out, b_out,
                seed, training=True):
    n, f_in = x.shape
    hidden = w1.shape[1]
    out_dim = w_out.shape[1]

    cfg = _chip_tuning()
    h_pad = _round_up(max(hidden, 128), 128)        # lane-dense hidden width
    g_pad = _round_up(max(num_graphs, 8), 8)        # sublane-dense graph axis

    tile = min(cfg["tile_cap"], _round_up(n, 128))
    if cfg["even_grid_i"]:
        # v7x: keep the parallel i axis at >= 2 blocks so both TensorCores work.
        while tile > 128 and (_round_up(n, tile) // tile) % 2 == 1:
            tile = max(128, tile // 2)
    n_pad = _round_up(n, tile)
    grid_i = n_pad // tile
    grid_k = n_pad // tile

    # ---- plain-JAX glue: graph -> dense bf16 operators (zero-padded) ----
    # TODO(synk): for realistically sparse graphs replace the dense adjacency /
    # PA with CSR indices + scalar-prefetch row-gather DMA so HBM traffic and
    # capacity scale with |E| instead of N^2.
    src, dst = edge_index[0], edge_index[1]

    # A built directly in bf16 (exact for small integer edge multiplicities);
    # avoids the f32 dense copy + cast pass entirely.
    adj = jnp.zeros((n_pad, n_pad), jnp.bfloat16).at[dst, src].add(
        jnp.ones(dst.shape[0], jnp.bfloat16))

    # PA = pool @ A assembled straight from the edge list (no dense matmul):
    #   PA[g, s] = sum_{edges (d, s) : batch[d] == g} 1 / |graph g|
    counts = jnp.zeros((g_pad,), jnp.float32).at[batch].add(1.0)
    inv_counts = 1.0 / jnp.maximum(counts, 1.0)
    pa = jnp.zeros((g_pad, n_pad), jnp.float32).at[batch[dst], src].add(
        inv_counts[batch[dst]])
    pa = pa.astype(jnp.bfloat16)

    x_pad = jnp.zeros((n_pad, f_in), jnp.bfloat16).at[:n, :].set(
        x.astype(jnp.bfloat16))
    w1_pad = jnp.zeros((f_in, h_pad), jnp.bfloat16).at[:, :hidden].set(
        w1.astype(jnp.bfloat16))
    # conv2.lin folded into the output Linear (exact); tiny, kept f32.
    w_fold = jnp.zeros((h_pad, out_dim), jnp.float32).at[:hidden, :].set(w2 @ w_out)

    seed_arr = jnp.asarray([seed], dtype=jnp.int32)

    # A tile spec: 3-deep buffering only where it pays (fast-HBM chips with a
    # long reduction axis); default double-buffer otherwise (v5e / tiny graphs).
    if cfg["a_depth"] > 2 and grid_k >= cfg["a_depth"]:
        a_spec = pl.BlockSpec((tile, tile), lambda i, k, s: (i, k),
                              pipeline_mode=pl.Buffered(cfg["a_depth"]))
    else:
        a_spec = pl.BlockSpec((tile, tile), lambda i, k, s: (i, k))

    grid_spec = pltpu.PrefetchScalarGridSpec(
        num_scalar_prefetch=1,                    # dropout seed lives in SMEM
        grid=(grid_i, grid_k),
        in_specs=[
            a_spec,                                                  # A  (bf16, streamed)
            pl.BlockSpec((n_pad, f_in), lambda i, k, s: (0, 0)),     # X  (bf16, resident)
            pl.BlockSpec((f_in, h_pad), lambda i, k, s: (0, 0)),     # W1 (bf16, resident)
            pl.BlockSpec((g_pad, tile), lambda i, k, s: (0, i)),     # PA columns (bf16)
        ],
        out_specs=pl.BlockSpec((1, g_pad, h_pad), lambda i, k, s: (i, 0, 0)),
        scratch_shapes=[pltpu.VMEM((tile, f_in), jnp.float32)],
    )

    cp_kwargs = dict(dimension_semantics=("parallel", "arbitrary"))  # megacore on i
    if cfg["vmem_limit"] is not None:
        cp_kwargs["vmem_limit_bytes"] = cfg["vmem_limit"]

    partials = pl.pallas_call(
        functools.partial(gcn_conv_kernel, tile=tile, training=training),
        out_shape=jax.ShapeDtypeStruct((grid_i, g_pad, h_pad), jnp.float32),
        grid_spec=grid_spec,
        compiler_params=pltpu.CompilerParams(**cp_kwargs),
    )(seed_arr, adj, x_pad, w1_pad, pa)

    # Tiny head: reduce per-tile partial pools, folded Linear + bias + sigmoid.
    out_pad = pl.pallas_call(
        gcn_head_kernel,
        out_shape=jax.ShapeDtypeStruct((g_pad, out_dim), jnp.float32),
    )(partials, w_fold, b_out)

    return out_pad[:num_graphs]


def glorot(key, shape):
    fan_in, fan_out = shape[0], shape[1]
    limit = jnp.sqrt(6.0 / (fan_in + fan_out))
    return jax.random.uniform(key, shape, jnp.float32, -limit, limit)


if __name__ == "__main__":
    # Small synthetic graph batch: 2 graphs x 8 nodes = 16 nodes.
    INPUT_DIM, HIDDEN, AGG, OUT = 8, 32, 16, 1
    N_NODES, NUM_GRAPHS = 16, 2

    key = jax.random.PRNGKey(0)
    k_x, k_e, k_w1, k_w2, k_wo, k_bo = jax.random.split(key, 6)

    x = jax.random.normal(k_x, (N_NODES, INPUT_DIM), jnp.float32)

    # Random edges, kept within each graph (nodes 0-7 -> graph 0, 8-15 -> graph 1).
    n_edges_per_graph = 20
    e0 = jax.random.randint(k_e, (2, n_edges_per_graph), 0, 8)
    e1 = jax.random.randint(jax.random.fold_in(k_e, 1), (2, n_edges_per_graph), 0, 8) + 8
    edge_index = jnp.concatenate([e0, e1], axis=1).astype(jnp.int32)   # [2, 40]

    batch = jnp.concatenate([jnp.zeros(8, jnp.int32), jnp.ones(8, jnp.int32)])

    # Parameters (glorot for GCNConv.lin weights, glorot + uniform bias for out Linear).
    w1 = glorot(k_w1, (INPUT_DIM, HIDDEN))     # conv1.lin (no bias)
    w2 = glorot(k_w2, (HIDDEN, AGG))           # conv2.lin (no bias)
    w_out = glorot(k_wo, (AGG, OUT))           # nn.Linear(agg, out)
    b_out = jax.random.uniform(k_bo, (1, OUT), jnp.float32,
                               -1.0 / jnp.sqrt(AGG), 1.0 / jnp.sqrt(AGG))

    out = gcn_forward(x, edge_index, batch, NUM_GRAPHS,
                      w1, w2, w_out, b_out, seed=42)
    out = jax.block_until_ready(out)
    assert out.shape == (NUM_GRAPHS, OUT)
    assert bool(jnp.all((out >= 0.0) & (out <= 1.0)))
    print("KERNEL_OK")
</pallas_src>

<mosaic_0001>
module attributes {stable_mosaic.version = 11 : i64} {
  func.func @gcn_conv_kernel(%arg0: i32, %arg1: i32, %arg2: memref<1xi32, #tpu.memory_space<smem>>, %arg3: memref<128x128xbf16, #tpu.memory_space<vmem>>, %arg4: memref<128x8xbf16, #tpu.memory_space<vmem>>, %arg5: memref<8x128xbf16, #tpu.memory_space<vmem>>, %arg6: memref<8x128xbf16, #tpu.memory_space<vmem>>, %arg7: memref<1x8x128xf32, #tpu.memory_space<vmem>>, %arg8: memref<128x8xf32, #tpu.memory_space<vmem>>) attributes {dimension_semantics = [#tpu.dimension_semantics<parallel>, #tpu.dimension_semantics<arbitrary>], iteration_bounds = array<i64: 1, 1>, scalar_prefetch = 1 : i64, scratch_operands = 1 : i64, tpu.core_type = #tpu.core_type<tc>, window_params = [{transform_indices = @transform_0, window_bounds = array<i64: 128, 128>}, {pipeline_mode = #tpu.pipeline_mode<synchronous>, transform_indices = @transform_1, window_bounds = array<i64: 128, 8>}, {pipeline_mode = #tpu.pipeline_mode<synchronous>, transform_indices = @transform_2, window_bounds = array<i64: 8, 128>}, {transform_indices = @transform_3, window_bounds = array<i64: 8, 128>}, {transform_indices = @transform_4, window_bounds = array<i64: 1, 8, 128>}]} {
    %c0_i32 = arith.constant 0 : i32
    %0 = arith.cmpi eq, %arg1, %c0_i32 : i32
    %1 = arith.extui %0 : i1 to i32
    %c0_i32_0 = arith.constant 0 : i32
    %2 = arith.cmpi ne, %1, %c0_i32_0 : i32
    scf.if %2 {
      %cst_9 = arith.constant 0.000000e+00 : f32
      %15 = vector.broadcast %cst_9 : f32 to vector<128x8xf32>
      %c0_10 = arith.constant 0 : index
      %c0_11 = arith.constant 0 : index
      %16 = vector.load %arg8[%c0_10, %c0_11] : memref<128x8xf32, #tpu.memory_space<vmem>>, vector<128x8xf32>
      tpu.vector_store %arg8[%c0_10, %c0_11], %15 {strides = array<i32>} : memref<128x8xf32, #tpu.memory_space<vmem>>, vector<128x8xf32>,
    } else {
    }
    %c128_i32 = arith.constant 128 : i32
    %3 = arith.muli %arg1, %c128_i32 : i32
    %4 = tpu.assume_multiple %3, 128 : i32
    %c0 = arith.constant 0 : index
    %c0_1 = arith.constant 0 : index
    %5 = vector.load %arg8[%c0, %c0_1] : memref<128x8xf32, #tpu.memory_space<vmem>>, vector<128x8xf32>
    %c0_2 = arith.constant 0 : index
    %c0_3 = arith.constant 0 : index
    %6 = vector.load %arg3[%c0_2, %c0_3] : memref<128x128xbf16, #tpu.memory_space<vmem>>, vector<128x128xbf16>
    %7 = arith.index_cast %4 : i32 to index
    %c0_4 = arith.constant 0 : index
    %8 = vector.load %arg4[%7, %c0_4] : memref<128x8xbf16, #tpu.memory_space<vmem>>, vector<128x8xbf16>
    %cst = arith.constant dense<0.000000e+00> : vector<128x8xf32>
    %9 = tpu.matmul %6, %8, %cst {dimension_numbers = #tpu.dot_dimension_numbers<[1], [0], [0], [1], [0, 0, 1, 1], [], []>} : vector<128x128xbf16>, vector<128x8xbf16>, vector<128x8xf32> -> vector<128x8xf32>
    %10 = arith.addf %5, %9 : vector<128x8xf32>
    %c0_5 = arith.constant 0 : index
    %c0_6 = arith.constant 0 : index
    %11 = vector.load %arg8[%c0_5, %c0_6] : memref<128x8xf32, #tpu.memory_space<vmem>>, vector<128x8xf32>
    tpu.vector_store %arg8[%c0_5, %c0_6], %10 {strides = array<i32>} : memref<128x8xf32, #tpu.memory_space<vmem>>, vector<128x8xf32>,
    %c0_i32_7 = arith.constant 0 : i32
    %12 = arith.cmpi eq, %arg1, %c0_i32_7 : i32
    %13 = arith.extui %12 : i1 to i32
    %c0_i32_8 = arith.constant 0 : i32
    %14 = arith.cmpi ne, %13, %c0_i32_8 : i32
    scf.if %14 {
      %c0_9 = arith.constant 0 : index
      %c0_10 = arith.constant 0 : index
      %15 = vector.load %arg8[%c0_9, %c0_10] : memref<128x8xf32, #tpu.memory_space<vmem>>, vector<128x8xf32>
      %16 = arith.truncf %15 : vector<128x8xf32> to vector<128x8xbf16>
      %c0_11 = arith.constant 0 : index
      %c0_12 = arith.constant 0 : index
      %17 = vector.load %arg5[%c0_11, %c0_12] : memref<8x128xbf16, #tpu.memory_space<vmem>>, vector<8x128xbf16>
      %cst_13 = arith.constant dense<0.000000e+00> : vector<128x128xf32>
      %18 = tpu.matmul %16, %17, %cst_13 {dimension_numbers = #tpu.dot_dimension_numbers<[1], [0], [0], [1], [0, 0, 1, 1], [], []>} : vector<128x8xbf16>, vector<8x128xbf16>, vector<128x128xf32> -> vector<128x128xf32>
      %cst_14 = arith.constant 0.000000e+00 : f32
      %19 = vector.broadcast %cst_14 : f32 to vector<128x128xf32>
      %20 = arith.maximumf %18, %19 : vector<128x128xf32>
      %21 = tpu.iota {dimensions = array<i32: 0>} : vector<128x128xi32>
      %c128_i32_15 = arith.constant 128 : i32
      %22 = arith.muli %arg0, %c128_i32_15 : i32
      %23 = vector.broadcast %22 : i32 to vector<128x128xi32>
      %24 = arith.addi %21, %23 : vector<128x128xi32>
      %25 = tpu.iota {dimensions = array<i32: 1>} : vector<128x128xi32>
      %c-1640531535_i32 = arith.constant -1640531535 : i32
      %26 = vector.broadcast %c-1640531535_i32 : i32 to vector<128x128xi32>
      %27 = arith.muli %24, %26 : vector<128x128xi32>
      %c-2048144777_i32 = arith.constant -2048144777 : i32
      %28 = vector.broadcast %c-2048144777_i32 : i32 to vector<128x128xi32>
      %29 = arith.muli %25, %28 : vector<128x128xi32>
      %30 = arith.addi %27, %29 : vector<128x128xi32>
      %c0_16 = arith.constant 0 : index
      %31 = memref.load %arg2[%c0_16] : memref<1xi32, #tpu.memory_space<smem>>
      %32 = vector.broadcast %31 : i32 to vector<128x128xi32>
      %33 = arith.addi %30, %32 : vector<128x128xi32>
      %c16_i32 = arith.constant 16 : i32
      %34 = vector.broadcast %c16_i32 : i32 to vector<128x128xi32>
      %35 = arith.shrui %33, %34 : vector<128x128xi32>
      %36 = arith.xori %33, %35 : vector<128x128xi32>
      %c2146121005_i32 = arith.constant 2146121005 : i32
      %37 = vector.broadcast %c2146121005_i32 : i32 to vector<128x128xi32>
      %38 = arith.muli %36, %37 : vector<128x128xi32>
      %c15_i32 = arith.constant 15 : i32
      %39 = vector.broadcast %c15_i32 : i32 to vector<128x128xi32>
      %40 = arith.shrui %38, %39 : vector<128x128xi32>
      %41 = arith.xori %38, %40 : vector<128x128xi32>
      %c-2073254261_i32 = arith.constant -2073254261 : i32
      %42 = vector.broadcast %c-2073254261_i32 : i32 to vector<128x128xi32>
      %43 = arith.muli %41, %42 : vector<128x128xi32>
      %c16_i32_17 = arith.constant 16 : i32
      %44 = vector.broadcast %c16_i32_17 : i32 to vector<128x128xi32>
      %45 = arith.shrui %43, %44 : vector<128x128xi32>
      %46 = arith.xori %43, %45 : vector<128x128xi32>
      %c1_i32 = arith.constant 1 : i32
      %47 = vector.broadcast %c1_i32 : i32 to vector<128x128xi32>
      %48 = arith.andi %46, %47 : vector<128x128xi32>
      %c0_i32_18 = arith.constant 0 : i32
      %49 = vector.broadcast %c0_i32_18 : i32 to vector<128x128xi32>
      %50 = arith.cmpi eq, %48, %49 : vector<128x128xi32>
      %cst_19 = arith.constant 0.000000e+00 : f32
      %cst_20 = arith.constant 2.000000e+00 : f32
      %51 = vector.broadcast %cst_19 : f32 to vector<128x128xf32>
      %52 = vector.broadcast %cst_20 : f32 to vector<128x128xf32>
      %53 = arith.select %50, %51, %52 : vector<128x128xi1>, vector<128x128xf32>
      %54 = arith.mulf %20, %53 : vector<128x128xf32>
      %c0_21 = arith.constant 0 : index
      %c0_22 = arith.constant 0 : index
      %55 = vector.load %arg6[%c0_21, %c0_22] : memref<8x128xbf16, #tpu.memory_space<vmem>>, vector<8x128xbf16>
      %56 = arith.truncf %54 : vector<128x128xf32> to vector<128x128xbf16>
      %cst_23 = arith.constant dense<0.000000e+00> : vector<8x128xf32>
      %57 = tpu.matmul %55, %56, %cst_23 {dimension_numbers = #tpu.dot_dimension_numbers<[1], [0], [0], [1], [0, 0, 1, 1], [], []>} : vector<8x128xbf16>, vector<128x128xbf16>, vector<8x128xf32> -> vector<8x128xf32>
      %c0_24 = arith.constant 0 : index
      %c0_25 = arith.constant 0 : index
      %c0_26 = arith.constant 0 : index
      %58 = vector.load %arg7[%c0_24, %c0_25, %c0_26] : memref<1x8x128xf32, #tpu.memory_space<vmem>>, vector<1x8x128xf32>
      %59 = vector.shape_cast %58 : vector<1x8x128xf32> to vector<8x128xf32>
      %60 = vector.shape_cast %57 : vector<8x128xf32> to vector<1x8x128xf32>
      tpu.vector_store %arg7[%c0_24, %c0_25, %c0_26], %60 {strides = array<i32>} : memref<1x8x128xf32, #tpu.memory_space<vmem>>, vector<1x8x128xf32>,
    } else {
    }
    return
  }
  func.func @transform_0(%arg0: i32, %arg1: i32, %arg2: memref<1xi32, #tpu.memory_space<smem>>) -> (i32, i32) {
    %c0_i32 = arith.constant 0 : i32
    return %arg0, %arg1 : i32, i32
  }
  func.func @transform_1(%arg0: i32, %arg1: i32, %arg2: memref<1xi32, #tpu.memory_space<smem>>) -> (i32, i32) {
    %c0_i32 = arith.constant 0 : i32
    %c0_i32_0 = arith.constant 0 : i32
    %c0_i32_1 = arith.constant 0 : i32
    return %c0_i32, %c0_i32_0 : i32, i32
  }
  func.func @transform_2(%arg0: i32, %arg1: i32, %arg2: memref<1xi32, #tpu.memory_space<smem>>) -> (i32, i32) {
    %c0_i32 = arith.constant 0 : i32
    %c0_i32_0 = arith.constant 0 : i32
    %c0_i32_1 = arith.constant 0 : i32
    return %c0_i32, %c0_i32_0 : i32, i32
  }
  func.func @transform_3(%arg0: i32, %arg1: i32, %arg2: memref<1xi32, #tpu.memory_space<smem>>) -> (i32, i32) {
    %c0_i32 = arith.constant 0 : i32
    %c0_i32_0 = arith.constant 0 : i32
    return %c0_i32, %arg0 : i32, i32
  }
  func.func @transform_4(%arg0: i32, %arg1: i32, %arg2: memref<1xi32, #tpu.memory_space<smem>>) -> (i32, i32, i32) {
    %c0_i32 = arith.constant 0 : i32
    %c0_i32_0 = arith.constant 0 : i32
    %c0_i32_1 = arith.constant 0 : i32
    return %arg0, %c0_i32, %c0_i32_0 : i32, i32, i32
  }
}

</mosaic_0001>

<bundles_post_ra>
// kernel: tpu_custom_call.1
= control target key start
LH: loop header
LB: loop body
LE: loop exit
PB: predicated region body
PF: predicated region fallthrough
CT: control target
= control target key end

     0   :  { %vm25_vm0 = vcmask 64512   ;;  %v1009_v2 = vmov 0.0   ;;  %s1277_s0 = inlined_call_operand.<no memory space> [shape: s32[1], index: 0, kind: input, shape index: {}]   ;;  %s1278_s1 = inlined_call_operand.vmem [shape: bf16[128,128], index: 1, kind: input, shape index: {}]   ;;  %s1279_s2 = inlined_call_operand.vmem [shape: bf16[128,8], index: 2, kind: input, shape index: {}]   ;;  %s1280_s3 = inlined_call_operand.vmem [shape: bf16[8,128], index: 3, kind: input, shape index: {}]   ;;  %s1281_s4 = inlined_call_operand.vmem [shape: bf16[8,128], index: 4, kind: input, shape index: {}]   ;;  %s1282_s5 = inlined_call_operand.hbm [shape: f32[1,8,128], index: 5, kind: output, shape index: {}]  }
   0x1   :  { %v969_v0 = vld [vmem:[%s1279_s2] sm:$0xff]   ;;  %v970_v1 = vld [vmem:[%s1279_s2 + $0x8] sm:$0xff]   ;;  %28 = vst.msk [vmem:[#allocation2 + $0x10] sm:$0xff] %vm25_vm0, %v1009_v2  ;;  %26 = vst.msk [vmem:[#allocation2] sm:$0xff] %vm25_vm0, %v1009_v2 }
   0x2   :  { %894 = vmatprep.subr.bf16.mxu0 %v969_v0  ;;  %27 = vst.msk [vmem:[#allocation2 + $0x8] sm:$0xff] %vm25_vm0, %v1009_v2  ;;  %29 = vst.msk [vmem:[#allocation2 + $0x18] sm:$0xff] %vm25_vm0, %v1009_v2  ;;  %v971_v3 = vld [vmem:[%s1279_s2 + $0x10] sm:$0xff]   ;;  %v972_v4 = vld [vmem:[%s1279_s2 + $0x18] sm:$0xff]  }
   0x3   :  { %30 = vst.msk [vmem:[#allocation2 + $0x20] sm:$0xff] %vm25_vm0, %v1009_v2  ;;  %31 = vst.msk [vmem:[#allocation2 + $0x28] sm:$0xff] %vm25_vm0, %v1009_v2  ;;  %895 = vmatpush3.bf16.msra.mxu0 %v969_v0  ;;  %v977_v5 = vld [vmem:[%s1278_s1] sm:$0xff]   ;;  %v974_v7 = vld [vmem:[%s1279_s2 + $0x28] sm:$0xff]  }
   0x4   :  { %32 = vst.msk [vmem:[#allocation2 + $0x30] sm:$0xff] %vm25_vm0, %v1009_v2  ;;  %33 = vst.msk [vmem:[#allocation2 + $0x38] sm:$0xff] %vm25_vm0, %v1009_v2  ;;  %896 = vmatprep.subr.bf16.mxu0 %v970_v1  ;;  %910 = vmatprep.mubr.bf16.mxu0 %v977_v5  ;;  %v973_v6 = vld [vmem:[%s1279_s2 + $0x20] sm:$0xff]  }
   0x5   :  { %34 = vst.msk [vmem:[#allocation2 + $0x40] sm:$0xff] %vm25_vm0, %v1009_v2  ;;  %35 = vst.msk [vmem:[#allocation2 + $0x48] sm:$0xff] %vm25_vm0, %v1009_v2 }
   0x6   :  { %36 = vst.msk [vmem:[#allocation2 + $0x50] sm:$0xff] %vm25_vm0, %v1009_v2  ;;  %37 = vst.msk [vmem:[#allocation2 + $0x58] sm:$0xff] %vm25_vm0, %v1009_v2 }
   0x7   :  { %38 = vst.msk [vmem:[#allocation2 + $0x60] sm:$0xff] %vm25_vm0, %v1009_v2  ;;  %39 = vst.msk [vmem:[#allocation2 + $0x68] sm:$0xff] %vm25_vm0, %v1009_v2  ;;  %897 = vmatpush3.bf16.msra.mxu0 %v970_v1 }
   0x8   :  { %40 = vst.msk [vmem:[#allocation2 + $0x70] sm:$0xff] %vm25_vm0, %v1009_v2  ;;  %41 = vst.msk [vmem:[#allocation2 + $0x78] sm:$0xff] %vm25_vm0, %v1009_v2  ;;  %898 = vmatprep.subr.bf16.mxu0 %v971_v3 }
   0xb   :  { %899 = vmatpush3.bf16.msra.mxu0 %v971_v3 }
   0xc   :  { %900 = vmatprep.subr.bf16.mxu0 %v972_v4 }
   0xf   :  { %901 = vmatpush3.bf16.msra.mxu0 %v972_v4 }
  0x10   :  { %902 = vmatprep.subr.bf16.mxu0 %v973_v6 }
  0x11   :  { %11 = vsyncpa [#allocation6], 0  ;;  %v975_v8 = vld [vmem:[%s1279_s2 + $0x30] sm:$0xff]   ;;  %v976_v9 = vld [vmem:[%s1279_s2 + $0x38] sm:$0xff]   ;;  %vm373_vm1 = vcmask 1043456   ;;  %vm1010_vm2 = vmmov 0  }
  0x12   :  { %v978_v10 = vld [vmem:[%s1278_s1 + $0x8] sm:$0xff]   ;;  %v979_v11 = vld [vmem:[%s1278_s1 + $0x10] sm:$0xff]   ;;  %v980_v12 = vld [vmem:[%s1278_s1 + $0x18] sm:$0xff]   ;;  %s1012_s27 = smov [#allocation5]  }
  0x13   :  { %903 = vmatpush3.bf16.msra.mxu0 %v973_v6  ;;  %v981_v13 = vld [vmem:[%s1278_s1 + $0x20] sm:$0xff]   ;;  %v982_v14 = vld [vmem:[%s1278_s1 + $0x28] sm:$0xff]   ;;  %v983_v15 = vld [vmem:[%s1278_s1 + $0x30] sm:$0xff]   ;;  %s826_s28 = sshll.u32 %s1012_s27, 4  ;;  %s827_s28 = int_to_ptr.vmem [resolvable:$true] %s826_s28 }
  0x14   :  { %904 = vmatprep.subr.bf16.mxu0 %v974_v7  ;;  %v984_v16 = vld [vmem:[%s1278_s1 + $0x38] sm:$0xff]   ;;  %v348_v17 = vld [vmem:[%s1280_s3] sm:$0xf]  ;;  %v45_v19 = vld [vmem:[#allocation2 + $0x10] sm:$0xff]  ;;  %s985_s29 = scalar_lea.vmem %s827_s28, 128  ;;  %p990_p1 = scmp.lt.s32.totalorder %s827_s28, %s827_s28 }
  0x15   :  { %964 = vmatprep.subr.msk.bf16.mxu1 %vm373_vm1, %v348_v17  ;;  %v375_v18 = vsel %vm373_vm1, %v348_v17, 0  ;;  %v43_v20 = vld [vmem:[#allocation2] sm:$0xff]  ;;  %v46_v22 = vld [vmem:[#allocation2 + $0x18] sm:$0xff]  ;;  %v44_v25 = vld [vmem:[#allocation2 + $0x8] sm:$0xff]  ;;  %p986_p0 = scmp.ne.s32.totalorder %s827_s28, %s985_s29  ;;  %p991_p2 = scmp.lt.s32.totalorder %s985_s29, %s985_s29 }
  0x16   :  { %927 = vmatpush3.bf16.msra.mxu1 %v375_v18  ;;  %v49_v31 = vld [vmem:[#allocation2 + $0x30] sm:$0xff]  ;;  %v47_v32 = vld [vmem:[#allocation2 + $0x20] sm:$0xff]  ;;  %v50_v34 = vld [vmem:[#allocation2 + $0x38] sm:$0xff] }
  0x17   :  { %905 = vmatpush3.bf16.msra.mxu0 %v974_v7  ;;  %944 = vmatprep.subr.bf16.mxu1 %v1009_v2  ;;  %v48_v37 = vld [vmem:[#allocation2 + $0x28] sm:$0xff]  ;;  %v53_v46 = vld [vmem:[#allocation2 + $0x50] sm:$0xff]  ;;  %v51_v49 = vld [vmem:[#allocation2 + $0x40] sm:$0xff]  ;;  %p992_p3 = por %p991_p2, %p990_p1 }
  0x18   :  { %906 = vmatprep.subr.bf16.mxu0 %v975_v8  ;;  %v54_v52 = vld [vmem:[#allocation2 + $0x58] sm:$0xff]  ;;  %v52_v55 = vld [vmem:[#allocation2 + $0x48] sm:$0xff]  ;;  %v57_v0 = vld [vmem:[#allocation2 + $0x70] sm:$0xff] }
  0x19   :  { %v55_v4 = vld [vmem:[#allocation2 + $0x60] sm:$0xff]  ;;  %v58_v7 = vld [vmem:[#allocation2 + $0x78] sm:$0xff]  ;;  %p993_p4 = pnand %p992_p3, %p986_p0 }
  0x1b   :  { %907 = vmatpush3.bf16.msra.mxu0 %v975_v8 }
  0x1c   :  { %908 = vmatprep.subr.bf16.mxu0 %v976_v9 }
  0x1f   :  { %909 = vmatpush3.bf16.msra.mxu0 %v976_v9 }
  0x22   :  { %911 = vmatmul.mubr.bf16.vlgmr.msra.gmra.mrb[0].mxu0 %v978_v10  ;;  %v56_v10 = vld [vmem:[#allocation2 + $0x68] sm:$0xff] }
  0x23   :  { %914 = vmatprep.mubr.bf16.mxu0 %v979_v11 }
  0x2a   :  { %915 = vmatmul.mubr.bf16.gmra.mrb[4].mxu0 %v980_v12 }
  0x2b   :  { %918 = vmatprep.mubr.bf16.mxu0 %v981_v13 }
  0x32   :  { %919 = vmatmul.mubr.bf16.gmra.mrb[8].mxu0 %v982_v14 }
  0x33   :  { %922 = vmatprep.mubr.bf16.mxu0 %v983_v15 }
  0x3a   :  { %923 = vmatmul.mubr.bf16.gmra.mrb[12].mxu0 %v984_v16 }
  0xf5   :  { %v912_v21 = vpop.f32.mrb[0].mxu0 }
  0xf6   :  { %v290_v23 = vadd.f32 %v912_v21, %v45_v19  ;;  %v225_v24 = vpop.f32.mrb[1].mxu0 }
  0xf7   :  { %v288_v26 = vadd.f32 %v225_v24, %v43_v20  ;;  %v913_v27 = vpop.f32.mrb[2].mxu0 }
  0xf8   :  { %307 = vst.msk [vmem:[#allocation2 + $0x10] sm:$0xff] %vm25_vm0, %v290_v23  ;;  %v291_v28 = vadd.f32 %v913_v27, %v46_v22  ;;  %v228_v29 = vpop.f32.mrb[3].mxu0 }
  0xf9   :  { %305 = vst.msk [vmem:[#allocation2] sm:$0xff] %vm25_vm0, %v288_v26  ;;  %v289_v30 = vadd.f32 %v228_v29, %v44_v25 }
  0xfa   :  { %308 = vst.msk [vmem:[#allocation2 + $0x18] sm:$0xff] %vm25_vm0, %v291_v28  ;;  %v490_v28 = vlaneseq }
  0xfb   :  { %306 = vst.msk [vmem:[#allocation2 + $0x8] sm:$0xff] %vm25_vm0, %v289_v30 }
  0xfc   :  { %v1152_v29 = vshrl.u32 %v490_v28, 7 }
  0xfd   :  { %v916_v33 = vpop.f32.mrb[4].mxu0 }
  0xfe   :  { %v294_v35 = vadd.f32 %v916_v33, %v49_v31  ;;  %v241_v36 = vpop.f32.mrb[5].mxu0  ;;  %v493_v30 = vadd.s32 16, %v1152_v29  ;;  %v526_v31 = vand.u32 127, %v490_v28 }
  0xff   :  { %v292_v38 = vadd.f32 %v241_v36, %v47_v32  ;;  %v917_v39 = vpop.f32.mrb[6].mxu0  ;;  %v326_v48 = vld [vmem:[#allocation2 + $0x10] sm:$0xff]  ;;  %v492_v36 = vadd.s32 8, %v1152_v29 }
 0x100   :  { %311 = vst.msk [vmem:[#allocation2 + $0x30] sm:$0xff] %vm25_vm0, %v294_v35  ;;  %v295_v40 = vadd.f32 %v917_v39, %v50_v34  ;;  %v244_v41 = vpop.f32.mrb[7].mxu0  ;;  %v324_v44 = vld [vmem:[#allocation2] sm:$0xff]  ;;  %v529_v32 = vmul.u32 2654435761, %v493_v30  ;;  %v494_v34 = vadd.s32 24, %v1152_v29  ;;  %v1164_v39 = vstv %s1277_s0 }
 0x101   :  { %309 = vst.msk [vmem:[#allocation2 + $0x20] sm:$0xff] %vm25_vm0, %v292_v38  ;;  %v293_v42 = vadd.f32 %v244_v41, %v48_v37  ;;  %v327_v43 = vld [vmem:[#allocation2 + $0x18] sm:$0xff]  ;;  %v1155_v33 = vmul.u32 2246822519, %v526_v31  ;;  %v527_v35 = vmul.u32 2654435761, %v1152_v29 }
 0x102   :  { %312 = vst.msk [vmem:[#allocation2 + $0x38] sm:$0xff] %vm25_vm0, %v295_v40  ;;  %v325_v45 = vld [vmem:[#allocation2 + $0x8] sm:$0xff]  ;;  %v341_v50 = vpack.c.bf16 %v327_v43, %v326_v48  ;;  %v530_v38 = vmul.u32 2654435761, %v494_v34  ;;  %v528_v41 = vmul.u32 2654435761, %v492_v36 }
 0x103   :  { %310 = vst.msk [vmem:[#allocation2 + $0x28] sm:$0xff] %vm25_vm0, %v293_v42  ;;  %v340_v47 = vpack.c.bf16 %v325_v45, %v324_v44  ;;  %v546_v37 = vadd.s32 %v1155_v33, %v529_v32  ;;  %v544_v40 = vadd.s32 %v1155_v33, %v527_v35  ;;  %v497_v44 = vadd.s32 48, %v1152_v29 }
 0x104   :  { %v547_v43 = vadd.s32 %v1155_v33, %v530_v38  ;;  %v495_v45 = vadd.s32 32, %v1152_v29  ;;  %v505_v38 = vadd.s32 112, %v1152_v29 }
 0x105   :  { %v920_v51 = vpop.f32.mrb[8].mxu0  ;;  %928 = vmatprep.mubr.msk.bf16.mxu1 %vm25_vm0, %v340_v47  ;;  %v564_v42 = vadd.s32 %v1164_v39, %v546_v37  ;;  %v545_v47 = vadd.s32 %v1155_v33, %v528_v41 }
 0x106   :  { %v298_v53 = vadd.f32 %v920_v51, %v53_v46  ;;  %v257_v54 = vpop.f32.mrb[9].mxu0  ;;  %929 = vmatmul.mubr.msk.bf16.vlgmr.msra.gmra.mrb[0].mxu1 %vm25_vm0, %v341_v50  ;;  %v562_v46 = vadd.s32 %v1164_v39, %v544_v40  ;;  %v533_v50 = vmul.u32 2654435761, %v497_v44  ;;  %v531_v51 = vmul.u32 2654435761, %v495_v45 }
 0x107   :  { %v296_v56 = vadd.f32 %v257_v54, %v51_v49  ;;  %v921_v57 = vpop.f32.mrb[10].mxu0  ;;  %v330_v3 = vld [vmem:[#allocation2 + $0x30] sm:$0xff]  ;;  %v580_v48 = vshrl.u32 %v564_v42, 16  ;;  %v565_v49 = vadd.s32 %v1164_v39, %v547_v43  ;;  %v506_v40 = vadd.s32 120, %v1152_v29 }
 0x108   :  { %315 = vst.msk [vmem:[#allocation2 + $0x50] sm:$0xff] %vm25_vm0, %v298_v53  ;;  %v299_v58 = vadd.f32 %v921_v57, %v54_v52  ;;  %v260_v59 = vpop.f32.mrb[11].mxu0  ;;  %v328_v62 = vld [vmem:[#allocation2 + $0x20] sm:$0xff]  ;;  %v498_v52 = vadd.s32 56, %v1152_v29  ;;  %v496_v53 = vadd.s32 40, %v1152_v29  ;;  %v578_v54 = vshrl.u32 %v562_v46, 16 }
 0x109   :  { %313 = vst.msk [vmem:[#allocation2 + $0x40] sm:$0xff] %vm25_vm0, %v296_v56  ;;  %v297_v60 = vadd.f32 %v260_v59, %v52_v55  ;;  %v331_v61 = vld [vmem:[#allocation2 + $0x38] sm:$0xff]  ;;  %v563_v55 = vadd.s32 %v1164_v39, %v545_v47  ;;  %v596_v56 = vxor.u32 %v580_v48, %v564_v42  ;;  %v581_v57 = vshrl.u32 %v565_v49, 16 }
 0x10a   :  { %316 = vst.msk [vmem:[#allocation2 + $0x58] sm:$0xff] %vm25_vm0, %v299_v58  ;;  %v329_v63 = vld [vmem:[#allocation2 + $0x28] sm:$0xff]  ;;  %v343_v5 = vpack.c.bf16 %v331_v61, %v330_v3  ;;  %v550_v58 = vadd.s32 %v1155_v33, %v533_v50  ;;  %v548_v59 = vadd.s32 %v1155_v33, %v531_v51  ;;  %v532_v61 = vmul.u32 2654435761, %v496_v53 }
 0x10b   :  { %314 = vst.msk [vmem:[#allocation2 + $0x48] sm:$0xff] %vm25_vm0, %v297_v60  ;;  %v342_v1 = vpack.c.bf16 %v329_v63, %v328_v62  ;;  %v534_v60 = vmul.u32 2654435761, %v498_v52  ;;  %v594_v62 = vxor.u32 %v578_v54, %v562_v46  ;;  %v579_v63 = vshrl.u32 %v563_v55, 16 }
 0x10c   :  { %v568_v3 = vadd.s32 %v1164_v39, %v550_v58  ;;  %v503_v43 = vadd.s32 96, %v1152_v29  ;;  %v504_v44 = vadd.s32 104, %v1152_v29  ;;  %v541_v54 = vmul.u32 2654435761, %v505_v38 }
 0x10d   :  { %v924_v6 = vpop.f32.mrb[12].mxu0  ;;  %932 = vmatprep.mubr.msk.bf16.mxu1 %vm25_vm0, %v342_v1  ;;  %v597_v1 = vxor.u32 %v581_v57, %v565_v49 }
 0x10e   :  { %v302_v8 = vadd.f32 %v924_v6, %v57_v0  ;;  %v273_v9 = vpop.f32.mrb[13].mxu0  ;;  %933 = vmatmul.mubr.msk.bf16.gmra.mrb[4].mxu1 %vm25_vm0, %v343_v5  ;;  %v612_v0 = vmul.u32 2146121005, %v596_v56  ;;  %v551_v5 = vadd.s32 %v1155_v33, %v534_v60  ;;  %v549_v6 = vadd.s32 %v1155_v33, %v532_v61 }
 0x10f   :  { %v300_v11 = vadd.f32 %v273_v9, %v55_v4  ;;  %v925_v12 = vpop.f32.mrb[14].mxu0  ;;  %v334_v20 = vld [vmem:[#allocation2 + $0x50] sm:$0xff]  ;;  %v566_v4 = vadd.s32 %v1164_v39, %v548_v59  ;;  %v499_v9 = vadd.s32 64, %v1152_v29  ;;  %v539_v58 = vmul.u32 2654435761, %v503_v43 }
 0x110   :  { %319 = vst.msk [vmem:[#allocation2 + $0x70] sm:$0xff] %vm25_vm0, %v302_v8  ;;  %v303_v13 = vadd.f32 %v925_v12, %v58_v7  ;;  %v276_v14 = vpop.f32.mrb[15].mxu0  ;;  %v332_v17 = vld [vmem:[#allocation2 + $0x40] sm:$0xff]  ;;  %v610_v7 = vmul.u32 2146121005, %v594_v62  ;;  %v501_v8 = vadd.s32 80, %v1152_v29 }
 0x111   :  { %317 = vst.msk [vmem:[#allocation2 + $0x60] sm:$0xff] %vm25_vm0, %v300_v11  ;;  %v301_v15 = vadd.f32 %v276_v14, %v56_v10  ;;  %v335_v16 = vld [vmem:[#allocation2 + $0x58] sm:$0xff]  ;;  %v595_v10 = vxor.u32 %v579_v63, %v563_v55  ;;  %v502_v11 = vadd.s32 88, %v1152_v29  ;;  %v628_v12 = vshrl.u32 %v612_v0, 15 }
 0x112   :  { %320 = vst.msk [vmem:[#allocation2 + $0x78] sm:$0xff] %vm25_vm0, %v303_v13  ;;  %v333_v18 = vld [vmem:[#allocation2 + $0x48] sm:$0xff]  ;;  %v345_v21 = vpack.c.bf16 %v335_v16, %v334_v20  ;;  %v613_v13 = vmul.u32 2146121005, %v597_v1  ;;  %v500_v14 = vadd.s32 72, %v1152_v29  ;;  %v582_v16 = vshrl.u32 %v566_v4, 16 }
 0x113   :  { %318 = vst.msk [vmem:[#allocation2 + $0x68] sm:$0xff] %vm25_vm0, %v301_v15  ;;  %v344_v19 = vpack.c.bf16 %v333_v18, %v332_v17  ;;  %v584_v15 = vshrl.u32 %v568_v3, 16  ;;  %v569_v17 = vadd.s32 %v1164_v39, %v551_v5  ;;  %v567_v18 = vadd.s32 %v1164_v39, %v549_v6 }
 0x114   :  { %v537_v20 = vmul.u32 2654435761, %v501_v8  ;;  %v629_v32 = vshrl.u32 %v613_v13, 15  ;;  %v542_v55 = vmul.u32 2654435761, %v506_v40  ;;  %v558_v6 = vadd.s32 %v1155_v33, %v541_v54 }
 0x115   :  { %936 = vmatprep.mubr.msk.bf16.mxu1 %vm25_vm0, %v344_v19  ;;  %v626_v19 = vshrl.u32 %v610_v7, 15  ;;  %v585_v28 = vshrl.u32 %v569_v17, 16  ;;  %v583_v30 = vshrl.u32 %v567_v18, 16  ;;  %v540_v59 = vmul.u32 2654435761, %v504_v44 }
 0x116   :  { %937 = vmatmul.mubr.msk.bf16.gmra.mrb[8].mxu1 %vm25_vm0, %v345_v21  ;;  %v535_v21 = vmul.u32 2654435761, %v499_v9  ;;  %v554_v34 = vadd.s32 %v1155_v33, %v537_v20  ;;  %v645_v50 = vxor.u32 %v629_v32, %v613_v13 }
 0x117   :  { %v338_v26 = vld [vmem:[#allocation2 + $0x70] sm:$0xff]  ;;  %v642_v31 = vxor.u32 %v626_v19, %v610_v7  ;;  %v601_v47 = vxor.u32 %v585_v28, %v569_v17  ;;  %v599_v48 = vxor.u32 %v583_v30, %v567_v18  ;;  %v559_v7 = vadd.s32 %v1155_v33, %v542_v55 }
 0x118   :  { %v336_v23 = vld [vmem:[#allocation2 + $0x60] sm:$0xff]  ;;  %v552_v35 = vadd.s32 %v1155_v33, %v535_v21  ;;  %v572_v51 = vadd.s32 %v1164_v39, %v554_v34 }
 0x119   :  { %v339_v22 = vld [vmem:[#allocation2 + $0x78] sm:$0xff]  ;;  %v658_v49 = vmul.u32 2221713035, %v642_v31  ;;  %v617_v61 = vmul.u32 2146121005, %v601_v47 }
 0x11a   :  { %v337_v24 = vld [vmem:[#allocation2 + $0x68] sm:$0xff]  ;;  %v347_v27 = vpack.c.bf16 %v339_v22, %v338_v26  ;;  %v611_v22 = vmul.u32 2146121005, %v595_v10  ;;  %v600_v26 = vxor.u32 %v584_v15, %v568_v3  ;;  %v570_v52 = vadd.s32 %v1164_v39, %v552_v35 }
 0x11b   :  { %v346_v25 = vpack.c.bf16 %v337_v24, %v336_v23  ;;  %v538_v23 = vmul.u32 2654435761, %v502_v11  ;;  %v644_v24 = vxor.u32 %v628_v12, %v612_v0  ;;  %v615_v62 = vmul.u32 2146121005, %v599_v48 }
 0x11c   :  { %v627_v36 = vshrl.u32 %v611_v22, 15  ;;  %v616_v45 = vmul.u32 2146121005, %v600_v26  ;;  %v661_v0 = vmul.u32 2221713035, %v645_v50  ;;  %v588_v1 = vshrl.u32 %v572_v51, 16 }
 0x11d   :  { %940 = vmatprep.mubr.msk.bf16.mxu1 %vm25_vm0, %v346_v25  ;;  %v536_v25 = vmul.u32 2654435761, %v500_v14  ;;  %v555_v37 = vadd.s32 %v1155_v33, %v538_v23  ;;  %v660_v41 = vmul.u32 2221713035, %v644_v24  ;;  %v586_v3 = vshrl.u32 %v570_v52, 16 }
 0x11e   :  { %941 = vmatmul.mubr.msk.bf16.gmra.mrb[12].mxu1 %vm25_vm0, %v347_v27  ;;  %v598_v27 = vxor.u32 %v582_v16, %v566_v4  ;;  %v643_v56 = vxor.u32 %v627_v36, %v611_v22  ;;  %v632_v29 = vshrl.u32 %v616_v45, 15  ;;  %v674_v4 = vshrl.u32 %v658_v49, 16 }
 0x11f   :  { %960 = vmatprep.mubr.msk.bf16.mxu1 %vm1010_vm2, %v1009_v2  ;;  %v553_v42 = vadd.s32 %v1155_v33, %v536_v25  ;;  %v573_v53 = vadd.s32 %v1164_v39, %v555_v37  ;;  %v676_v63 = vshrl.u32 %v660_v41, 16  ;;  %v556_v10 = vadd.s32 %v1155_v33, %v539_v58 }
 0x120   :  { %v614_v46 = vmul.u32 2146121005, %v598_v27  ;;  %v659_v8 = vmul.u32 2221713035, %v643_v56  ;;  %v557_v11 = vadd.s32 %v1155_v33, %v540_v59  ;;  %v648_v12 = vxor.u32 %v632_v29, %v616_v45 }
 0x121   :  { %v571_v57 = vadd.s32 %v1164_v39, %v553_v42  ;;  %v589_v5 = vshrl.u32 %v573_v53, 16  ;;  %v633_v14 = vshrl.u32 %v617_v61, 15  ;;  %v631_v15 = vshrl.u32 %v615_v62, 15 }
 0x122   :  { %v630_v60 = vshrl.u32 %v614_v46, 15  ;;  %v692_v16 = vxor.u32 %v676_v63, %v660_v41  ;;  %v677_v17 = vshrl.u32 %v661_v0, 16  ;;  %v604_v18 = vxor.u32 %v588_v1, %v572_v51 }
 0x123   :  { %v587_v9 = vshrl.u32 %v571_v57, 16  ;;  %v602_v19 = vxor.u32 %v586_v3, %v570_v52  ;;  %v690_v20 = vxor.u32 %v674_v4, %v658_v49  ;;  %v605_v21 = vxor.u32 %v589_v5, %v573_v53 }
 0x124   :  { %v646_v13 = vxor.u32 %v630_v60, %v614_v46  ;;  %v576_v22 = vadd.s32 %v1164_v39, %v558_v6  ;;  %v577_v23 = vadd.s32 %v1164_v39, %v559_v7  ;;  %v675_v24 = vshrl.u32 %v659_v8, 16 }
 0x125   :  { %v603_v25 = vxor.u32 %v587_v9, %v571_v57  ;;  %v574_v26 = vadd.s32 %v1164_v39, %v556_v10  ;;  %v575_v33 = vadd.s32 %v1164_v39, %v557_v11  ;;  %v664_v27 = vmul.u32 2221713035, %v648_v12 }
 0x126   :  { %v662_v28 = vmul.u32 2221713035, %v646_v13  ;;  %v649_v30 = vxor.u32 %v633_v14, %v617_v61  ;;  %v647_v31 = vxor.u32 %v631_v15, %v615_v62  ;;  %v708_v32 = vand.u32 1, %v692_v16 }
 0x127   :  { %v620_v34 = vmul.u32 2146121005, %v604_v18  ;;  %v618_v35 = vmul.u32 2146121005, %v602_v19  ;;  %v693_v36 = vxor.u32 %v677_v17, %v661_v0  ;;  %v592_v38 = vshrl.u32 %v576_v22, 16 }
 0x128   :  { %v621_v37 = vmul.u32 2146121005, %v605_v21  ;;  %v593_v40 = vshrl.u32 %v577_v23, 16  ;;  %v706_v41 = vand.u32 1, %v690_v20  ;;  %v619_v42 = vmul.u32 2146121005, %v603_v25 }
 0x129   :  { %v590_v43 = vshrl.u32 %v574_v26, 16  ;;  %v591_v44 = vshrl.u32 %v575_v33, 16  ;;  %v691_v45 = vxor.u32 %v675_v24, %v659_v8  ;;  %v680_v46 = vshrl.u32 %v664_v27, 16 }
 0x12a   :  { %v665_v47 = vmul.u32 2221713035, %v649_v30  ;;  %v663_v48 = vmul.u32 2221713035, %v647_v31  ;;  %vm1209_vm3 = vcmp.eq.s32.totalorder %v708_v32, 0  ;;  %v678_v49 = vshrl.u32 %v662_v28, 16 }
 0x12b   :  { %v636_v50 = vshrl.u32 %v620_v34, 15  ;;  %v634_v51 = vshrl.u32 %v618_v35, 15  ;;  %v637_v52 = vshrl.u32 %v621_v37, 15  ;;  %v608_v53 = vxor.u32 %v592_v38, %v576_v22 }
 0x12c   :  { %v609_v54 = vxor.u32 %v593_v40, %v577_v23  ;;  %v709_v55 = vand.u32 1, %v693_v36  ;;  %v635_v56 = vshrl.u32 %v619_v42, 15  ;;  %v606_v57 = vxor.u32 %v590_v43, %v574_v26 }
 0x12d   :  { %v607_v58 = vxor.u32 %v591_v44, %v575_v33  ;;  %v707_v59 = vand.u32 1, %v691_v45  ;;  %v696_v29 = vxor.u32 %v680_v46, %v664_v27  ;;  %v681_v60 = vshrl.u32 %v665_v47, 16 }
 0x12e   :  { %v679_v61 = vshrl.u32 %v663_v48, 16  ;;  %v1011_v62 = vmov 2.0   ;;  %v694_v0 = vxor.u32 %v678_v49, %v662_v28  ;;  %v652_v1 = vxor.u32 %v636_v50, %v620_v34 }
 0x12f   :  { %v740_v63 = vsel %vm1209_vm3, 0.0, %v1011_v62  ;;  %v650_v3 = vxor.u32 %v634_v51, %v618_v35  ;;  %vm722_vm4 = vcmp.eq.s32.totalorder %v706_v41, 0  ;;  %v653_v4 = vxor.u32 %v637_v52, %v621_v37 }
 0x130   :  { %v624_v5 = vmul.u32 2146121005, %v608_v53  ;;  %v625_v6 = vmul.u32 2146121005, %v609_v54  ;;  %vm725_vm5 = vcmp.eq.s32.totalorder %v709_v55, 0  ;;  %v651_v7 = vxor.u32 %v635_v56, %v619_v42 }
 0x131   :  { %v622_v8 = vmul.u32 2146121005, %v606_v57  ;;  %v623_v9 = vmul.u32 2146121005, %v607_v58  ;;  %vm723_vm6 = vcmp.eq.s32.totalorder %v707_v59, 0  ;;  %v712_v10 = vand.u32 1, %v696_v29 }
 0x132   :  { %v697_v11 = vxor.u32 %v681_v60, %v665_v47  ;;  %v695_v12 = vxor.u32 %v679_v61, %v663_v48  ;;  %v738_v13 = vsel %vm722_vm4, 0.0, %v1011_v62  ;;  %v710_v14 = vand.u32 1, %v694_v0 }
 0x133   :  { %v668_v15 = vmul.u32 2221713035, %v652_v1  ;;  %v666_v16 = vmul.u32 2221713035, %v650_v3  ;;  %v741_v17 = vsel %vm725_vm5, 0.0, %v1011_v62  ;;  %v640_v19 = vshrl.u32 %v624_v5, 15 }
 0x134   :  { %v669_v18 = vmul.u32 2221713035, %v653_v4  ;;  %v641_v20 = vshrl.u32 %v625_v6, 15  ;;  %v739_v22 = vsel %vm723_vm6, 0.0, %v1011_v62  ;;  %v667_v23 = vmul.u32 2221713035, %v651_v7 }
 0x135   :  { %v638_v24 = vshrl.u32 %v622_v8, 15  ;;  %v639_v25 = vshrl.u32 %v623_v9, 15  ;;  %vm1219_vm7 = vcmp.eq.s32.totalorder %v712_v10, 0  ;;  %v713_v28 = vand.u32 1, %v697_v11 }
 0x136   :  { %v711_v30 = vand.u32 1, %v695_v12  ;;  %vm1223_vm8 = vcmp.eq.s32.totalorder %v710_v14, 0  ;;  %v684_v35 = vshrl.u32 %v668_v15, 16  ;;  %v682_v36 = vshrl.u32 %v666_v16, 16 }
 0x137   :  { %v685_v40 = vshrl.u32 %v669_v18, 16  ;;  %v656_v41 = vxor.u32 %v640_v19, %v624_v5  ;;  %v657_v42 = vxor.u32 %v641_v20, %v625_v6  ;;  %v683_v44 = vshrl.u32 %v667_v23, 16 }
 0x138   :  { %v654_v45 = vxor.u32 %v638_v24, %v622_v8  ;;  %v655_v46 = vxor.u32 %v639_v25, %v623_v9  ;;  %vm1227_vm9 = vcmp.eq.s32.totalorder %v713_v28, 0  ;;  %vm1231_vm10 = vcmp.eq.s32.totalorder %v711_v30, 0 }
 0x139   :  { %v700_v52 = vxor.u32 %v684_v35, %v668_v15  ;;  %v698_v53 = vxor.u32 %v682_v36, %v666_v16  ;;  %v701_v55 = vxor.u32 %v685_v40, %v669_v18  ;;  %v672_v56 = vmul.u32 2221713035, %v656_v41 }
 0x13a   :  { %v673_v57 = vmul.u32 2221713035, %v657_v42  ;;  %v699_v29 = vxor.u32 %v683_v44, %v667_v23  ;;  %v670_v60 = vmul.u32 2221713035, %v654_v45  ;;  %v744_v0 = vsel %vm1219_vm7, 0.0, %v1011_v62 }
 0x13b   :  { %v671_v61 = vmul.u32 2221713035, %v655_v46  ;;  %v742_v3 = vsel %vm1223_vm8, 0.0, %v1011_v62  ;;  %v745_v4 = vsel %vm1227_vm9, 0.0, %v1011_v62  ;;  %v743_v7 = vsel %vm1231_vm10, 0.0, %v1011_v62 }
 0x13c   :  { %v716_v8 = vand.u32 1, %v700_v52  ;;  %v714_v9 = vand.u32 1, %v698_v53  ;;  %v717_v12 = vand.u32 1, %v701_v55  ;;  %v689_v14 = vshrl.u32 %v673_v57, 16 }
 0x13d   :  { %v715_v16 = vand.u32 1, %v699_v29  ;;  %v687_v18 = vshrl.u32 %v671_v61, 16 }
 0x13e   :  { %vm732_vm11 = vcmp.eq.s32.totalorder %v716_v8, 0  ;;  %vm730_vm12 = vcmp.eq.s32.totalorder %v714_v9, 0  ;;  %vm733_vm13 = vcmp.eq.s32.totalorder %v717_v12, 0  ;;  %v705_v25 = vxor.u32 %v689_v14, %v673_v57 }
 0x13f   :  { %vm731_vm14 = vcmp.eq.s32.totalorder %v715_v16, 0  ;;  %v703_v28 = vxor.u32 %v687_v18, %v671_v61  ;;  %v746_v35 = vsel %vm730_vm12, 0.0, %v1011_v62 }
 0x140   :  { %v747_v41 = vsel %vm731_vm14, 0.0, %v1011_v62 }
 0x141   :  { %v719_v46 = vand.u32 1, %v703_v28 }
 0x143   :  { %vm735_vm2 = vcmp.eq.s32.totalorder %v719_v46, 0 }
 0x144   :  { %v751_v61 = vsel %vm735_vm2, 0.0, %v1011_v62 }
 0x1d9   :  { %v930_v21 = vpop.f32.mrb[0].mxu1 }
 0x1da   :  { %v476_v26 = vmax.f32 %v930_v21, 0.0  ;;  %v411_v33 = vpop.f32.mrb[1].mxu1 }
 0x1db   :  { %v474_v31 = vmax.f32 %v411_v33, 0.0  ;;  %v931_v32 = vpop.f32.mrb[2].mxu1 }
 0x1dc   :  { %v477_v37 = vmax.f32 %v931_v32, 0.0  ;;  %v414_v38 = vpop.f32.mrb[3].mxu1  ;;  %v756_v47 = vmul.f32 %v740_v63, %v476_v26  ;;  %v748_v32 = vsel %vm732_vm11, 0.0, %v1011_v62 }
 0x1dd   :  { %v475_v43 = vmax.f32 %v414_v38, 0.0  ;;  %v754_v50 = vmul.f32 %v738_v13, %v474_v31  ;;  %v688_v13 = vshrl.u32 %v672_v56, 16 }
 0x1de   :  { %v757_v48 = vmul.f32 %v741_v17, %v477_v37  ;;  %v686_v17 = vshrl.u32 %v670_v60, 16  ;;  %v749_v37 = vsel %vm733_vm13, 0.0, %v1011_v62 }
 0x1df   :  { %v755_v51 = vmul.f32 %v739_v22, %v475_v43  ;;  %v704_v24 = vxor.u32 %v688_v13, %v672_v56  ;;  %v721_v43 = vand.u32 1, %v705_v25 }
 0x1e0   :  { %v772_v54 = vpack.c.bf16 %v757_v48, %v756_v47  ;;  %v702_v27 = vxor.u32 %v686_v17, %v670_v60 }
 0x1e1   :  { %v771_v58 = vpack.c.bf16 %v755_v51, %v754_v50  ;;  %v934_v59 = vpop.f32.mrb[4].mxu1  ;;  %v720_v42 = vand.u32 1, %v704_v24  ;;  %vm737_vm0 = vcmp.eq.s32.totalorder %v721_v43, 0 }
 0x1e2   :  { %v480_v63 = vmax.f32 %v934_v59, 0.0  ;;  %v427_v1 = vpop.f32.mrb[5].mxu1  ;;  %v718_v45 = vand.u32 1, %v702_v27 }
 0x1e3   :  { %v478_v5 = vmax.f32 %v427_v1, 0.0  ;;  %v935_v6 = vpop.f32.mrb[6].mxu1  ;;  %945 = vmatpush3.bf16.msra.mxu1 %v771_v58  ;;  %vm736_vm15 = vcmp.eq.s32.totalorder %v720_v42, 0  ;;  %v753_v58 = vsel %vm737_vm0, 0.0, %v1011_v62 }
 0x1e4   :  { %v481_v10 = vmax.f32 %v935_v6, 0.0  ;;  %v430_v11 = vpop.f32.mrb[7].mxu1  ;;  %946 = vmatprep.subr.bf16.mxu1 %v1009_v2  ;;  %v760_v19 = vmul.f32 %v744_v0, %v480_v63  ;;  %vm734_vm1 = vcmp.eq.s32.totalorder %v718_v45, 0  ;;  %v752_v55 = vsel %vm736_vm15, 0.0, %v1011_v62 }
 0x1e5   :  { %v479_v15 = vmax.f32 %v430_v11, 0.0  ;;  %v758_v21 = vmul.f32 %v742_v3, %v478_v5  ;;  %v750_v59 = vsel %vm734_vm1, 0.0, %v1011_v62  ;;  %v770_v62 = vld [vmem:[%s1281_s4] sm:$0xf] }
 0x1e6   :  { %v761_v20 = vmul.f32 %v745_v4, %v481_v10 }
 0x1e7   :  { %v759_v22 = vmul.f32 %v743_v7, %v479_v15  ;;  %947 = vmatpush3.bf16.msra.mxu1 %v772_v54 }
 0x1e8   :  { %v774_v23 = vpack.c.bf16 %v761_v20, %v760_v19  ;;  %948 = vmatprep.subr.bf16.mxu1 %v1009_v2 }
 0x1e9   :  { %v773_v26 = vpack.c.bf16 %v759_v22, %v758_v21  ;;  %v938_v33 = vpop.f32.mrb[8].mxu1 }
 0x1ea   :  { %v484_v30 = vmax.f32 %v938_v33, 0.0  ;;  %v443_v31 = vpop.f32.mrb[9].mxu1 }
 0x1eb   :  { %v482_v34 = vmax.f32 %v443_v31, 0.0  ;;  %v939_v36 = vpop.f32.mrb[10].mxu1  ;;  %949 = vmatpush3.bf16.msra.mxu1 %v773_v26 }
 0x1ec   :  { %v485_v38 = vmax.f32 %v939_v36, 0.0  ;;  %v446_v40 = vpop.f32.mrb[11].mxu1  ;;  %950 = vmatprep.subr.bf16.mxu1 %v1009_v2  ;;  %v764_v47 = vmul.f32 %v748_v32, %v484_v30 }
 0x1ed   :  { %v483_v44 = vmax.f32 %v446_v40, 0.0  ;;  %v762_v39 = vmul.f32 %v746_v35, %v482_v34 }
 0x1ee   :  { %v765_v48 = vmul.f32 %v749_v37, %v485_v38 }
 0x1ef   :  { %v763_v49 = vmul.f32 %v747_v41, %v483_v44  ;;  %951 = vmatpush3.bf16.msra.mxu1 %v774_v23 }
 0x1f0   :  { %v776_v50 = vpack.c.bf16 %v765_v48, %v764_v47  ;;  %952 = vmatprep.subr.bf16.mxu1 %v1009_v2 }
 0x1f1   :  { %v775_v51 = vpack.c.bf16 %v763_v49, %v762_v39  ;;  %v942_v52 = vpop.f32.mrb[12].mxu1 }
 0x1f2   :  { %v488_v53 = vmax.f32 %v942_v52, 0.0  ;;  %v459_v54 = vpop.f32.mrb[13].mxu1 }
 0x1f3   :  { %v486_v56 = vmax.f32 %v459_v54, 0.0  ;;  %v943_v57 = vpop.f32.mrb[14].mxu1  ;;  %953 = vmatpush3.bf16.msra.mxu1 %v775_v51 }
 0x1f4   :  { %v489_v29 = vmax.f32 %v943_v57, 0.0  ;;  %v462_v60 = vpop.f32.mrb[15].mxu1  ;;  %954 = vmatprep.subr.bf16.mxu1 %v1009_v2  ;;  %v768_v0 = vmul.f32 %v752_v55, %v488_v53 }
 0x1f5   :  { %v487_v63 = vmax.f32 %v462_v60, 0.0  ;;  %v766_v3 = vmul.f32 %v750_v59, %v486_v56 }
 0x1f6   :  { %v769_v1 = vmul.f32 %v753_v58, %v489_v29 }
 0x1f7   :  { %v767_v4 = vmul.f32 %v751_v61, %v487_v63  ;;  %955 = vmatpush3.bf16.msra.mxu1 %v776_v50 }
 0x1f8   :  { %v778_v5 = vpack.c.bf16 %v769_v1, %v768_v0  ;;  %956 = vmatprep.subr.bf16.mxu1 %v1009_v2 }
 0x1f9   :  { %v777_v6 = vpack.c.bf16 %v767_v4, %v766_v3 }
 0x1fb   :  { %957 = vmatpush3.bf16.msra.mxu1 %v777_v6 }
 0x1fc   :  { %958 = vmatprep.subr.bf16.mxu1 %v1009_v2 }
 0x1ff   :  { %959 = vmatpush3.bf16.msra.mxu1 %v778_v5 }
 0x202   :  { %961 = vmatmul.mubr.bf16.vlgmr.msra.gmra.mrb[16].mxu1 %v770_v62 }
 0x2d5   :  { %v813_v7 = vpop.f32.mrb[16].mxu1 }
 0x2d6   :  { %819 = vst [vmem:[#allocation5] sm:$0xff] %v813_v7  ;;  %v962_v8 = vpop.f32.mrb[17].mxu1 }
 0x2d7   :  { %v816_v9 = vpop.f32.mrb[18].mxu1 }
 0x2d8   :  { %996 = shalt.err (!%p993_p4)
}
 0x2d9   :  { %s997_s7 = scalar_lea.hbm %s1282_s5, 128 }
 0x2da   :  { %p998_p5 = scmp.ne.s32.totalorder %s1282_s5, %s997_s7  ;;  %p1001_p6 = scmp.lt.u32.totalorder %s997_s7, %s1282_s5 }
 0x2dc   :  { %p1003_p7 = pnand %p1001_p6, %p998_p5 }
 0x2de   :  { %1006 = shalt.err (!%p1003_p7)
}
 0x2df   :  { %829 = dma.vmem_to_hbm [thread:$0]  %s827_s28, 128, %s1282_s5, [#allocation6]   ;;  %v963_v2 = vpop.f32.mrb[19].mxu1 }
 0x2e0   :  { %1007 = dma.done.wait [#allocation6], 128  }
 0x2e1   :  { %1008 = vsyncadd [#allocation6], 4294967168 }
 0x2e2   :  { %833 = vsyncpa [#allocation6], 1 }

</bundles_post_ra>
